<compile_context>
chip_gen: v7x
topology: tpu7x:2x2x1
jax: 0.10.0
libtpu: 0.0.40
codegen_flags: <defaults>
</compile_context>

<pallas_src>
import functools
import math

import jax
import jax.numpy as jnp
from jax.experimental import pallas as pl
from jax.experimental.pallas import tpu as pltpu

_TARGET_BLOCK_BYTES = 4 * 1024 * 1024   # ~4 MiB per block
_VMEM_LIMIT_BYTES = 32 * 1024 * 1024    # safe on v5e/v6e/v7x


def _sublane_multiple(dtype) -> int:
    # Sublane packing: 8 rows for 4-byte dtypes, 16 for 2-byte, 32 for 1-byte.
    return max(8, 32 // jnp.dtype(dtype).itemsize)


# ---------------------------------------------------------------------------
# Kernels
# ---------------------------------------------------------------------------
def _roll_lanes_kernel(x_ref, o_ref, *, shift):
    # out[:, i] = x[:, (i - shift) % n]; 0 < shift < n is guaranteed.
    n = x_ref.shape[-1]
    s = shift
    o_ref[:, s:] = x_ref[:, : n - s]
    o_ref[:, :s] = x_ref[:, n - s:]


def _roll_middle_kernel(x_ref, o_ref, *, shift):
    # out[:, i, :] = x[:, (i - shift) % n, :]; middle axis is never tiled.
    n = x_ref.shape[1]
    s = shift
    o_ref[:, s:, :] = x_ref[:, : n - s, :]
    o_ref[:, :s, :] = x_ref[:, n - s:, :]


# ---------------------------------------------------------------------------
# pallas_call wrappers
# ---------------------------------------------------------------------------
def _roll_last_axis(x2d, s):
    a, n = x2d.shape
    mult = _sublane_multiple(x2d.dtype)
    row_bytes = n * x2d.dtype.itemsize
    tile = max(1, _TARGET_BLOCK_BYTES // max(1, row_bytes))
    tile = max(mult, (tile // mult) * mult)
    if tile >= a:
        tile = a
    return pl.pallas_call(
        functools.partial(_roll_lanes_kernel, shift=s),
        out_shape=jax.ShapeDtypeStruct((a, n), x2d.dtype),
        grid=(pl.cdiv(a, tile),),
        in_specs=[pl.BlockSpec((tile, n), lambda i: (i, 0))],
        out_specs=pl.BlockSpec((tile, n), lambda i: (i, 0)),
        compiler_params=pltpu.CompilerParams(
            dimension_semantics=("parallel",),
            vmem_limit_bytes=_VMEM_LIMIT_BYTES),
    )(x2d)


def _roll_middle_axis(x3d, s):
    # x3d: (A, n, R); roll along axis 1. Axis 1 stays whole inside a block,
    # A and R are tiled on the grid.
    a, n, r = x3d.shape
    item = x3d.dtype.itemsize
    slice_bytes = n * r * item

    if slice_bytes <= _TARGET_BLOCK_BYTES or r <= 128:
        tile_r = r
        tile_a = max(1, _TARGET_BLOCK_BYTES // max(1, slice_bytes))
        tile_a = min(tile_a, a)
    else:
        # Big trailing extent: keep one leading row, tile lanes in 128-chunks.
        tile_a = 1
        tile_r = max(128, (_TARGET_BLOCK_BYTES // max(1, n * item)) // 128 * 128)
        tile_r = min(tile_r, r)

    return pl.pallas_call(
        functools.partial(_roll_middle_kernel, shift=s),
        out_shape=jax.ShapeDtypeStruct((a, n, r), x3d.dtype),
        grid=(pl.cdiv(a, tile_a), pl.cdiv(r, tile_r)),
        in_specs=[pl.BlockSpec((tile_a, n, tile_r), lambda i, j: (i, 0, j))],
        out_specs=pl.BlockSpec((tile_a, n, tile_r), lambda i, j: (i, 0, j)),
        compiler_params=pltpu.CompilerParams(
            dimension_semantics=("parallel", "parallel"),
            vmem_limit_bytes=_VMEM_LIMIT_BYTES),
    )(x3d)


# ---------------------------------------------------------------------------
# Public entry point (== PyTorch Roll(shift, dim).forward)
# ---------------------------------------------------------------------------
def roll(x, shift, dim):
    """Pallas-backed equivalent of the PyTorch Roll module's forward."""
    if shift == 0 or x.size == 0:
        return x

    ndim = x.ndim
    dim = dim % ndim
    n = x.shape[dim]
    s = int(shift) % n  # handles negative shifts / shifts > n spherically
    if s == 0:
        return x

    shape = x.shape
    if dim == ndim - 1:
        a = math.prod(shape[:-1])
        y = _roll_last_axis(x.reshape(a, n), s)
    else:
        a = math.prod(shape[:dim])
        r = math.prod(shape[dim + 1:])
        y = _roll_middle_axis(x.reshape(a, n, r), s)
    return y.reshape(shape)


if __name__ == "__main__":
    key = jax.random.PRNGKey(0)
    x = jax.random.normal(key, (2, 4, 16, 16), dtype=jnp.float32)

    cases = [
        (3, 3),    # positive shift along W  -> lane-rotate kernel
        (-5, 2),   # negative shift along H  -> middle-axis rotate kernel
        (1, 1),    # shift along C           -> middle-axis rotate kernel
        (-1, 0),   # shift along N           -> middle-axis rotate kernel
        (0, 1),    # zero shift              -> identity fast path
        (19, 3),   # shift > dim size        -> wraps spherically
    ]
    for shift, dim in cases:
        y = roll(x, shift, dim)
        jax.block_until_ready(y)
        ref = jnp.roll(x, shift, axis=dim)
        assert y.shape == x.shape, f"shape mismatch for shift={shift}, dim={dim}"
        assert jnp.array_equal(y, ref), f"roll mismatch for shift={shift}, dim={dim}"

    # Also exercise a 2-byte dtype (sublane-packing path).
    xb = jax.random.normal(jax.random.PRNGKey(1), (2, 4, 16, 16)).astype(jnp.bfloat16)
    for shift, dim in [(5, 3), (-2, 1)]:
        y = roll(xb, shift, dim)
        jax.block_until_ready(y)
        ref = jnp.roll(xb, shift, axis=dim)
        assert jnp.array_equal(y, ref), f"bf16 roll mismatch for shift={shift}, dim={dim}"

    print("KERNEL_OK")
</pallas_src>

<mosaic_0001>
module attributes {stable_mosaic.version = 11 : i64} {
  func.func @_roll_lanes_kernel(%arg0: i32, %arg1: memref<128x16xf32, #tpu.memory_space<vmem>>, %arg2: memref<128x16xf32, #tpu.memory_space<vmem>>) attributes {dimension_semantics = [#tpu.dimension_semantics<parallel>], iteration_bounds = array<i64: 1>, scalar_prefetch = 0 : i64, scratch_operands = 0 : i64, tpu.core_type = #tpu.core_type<tc>, window_params = [{transform_indices = @transform_0, window_bounds = array<i64: 128, 16>}, {transform_indices = @transform_1, window_bounds = array<i64: 128, 16>}]} {
    %c0 = arith.constant 0 : index
    %c0_0 = arith.constant 0 : index
    %0 = vector.load %arg1[%c0, %c0_0] : memref<128x16xf32, #tpu.memory_space<vmem>>, vector<128x13xf32>
    %c0_1 = arith.constant 0 : index
    %c3 = arith.constant 3 : index
    %1 = vector.load %arg2[%c0_1, %c3] : memref<128x16xf32, #tpu.memory_space<vmem>>, vector<128x13xf32>
    tpu.vector_store %arg2[%c0_1, %c3], %0 {strides = array<i32>} : memref<128x16xf32, #tpu.memory_space<vmem>>, vector<128x13xf32>,
    %c0_2 = arith.constant 0 : index
    %c13 = arith.constant 13 : index
    %2 = vector.load %arg1[%c0_2, %c13] : memref<128x16xf32, #tpu.memory_space<vmem>>, vector<128x3xf32>
    %c0_3 = arith.constant 0 : index
    %c0_4 = arith.constant 0 : index
    %3 = vector.load %arg2[%c0_3, %c0_4] : memref<128x16xf32, #tpu.memory_space<vmem>>, vector<128x3xf32>
    tpu.vector_store %arg2[%c0_3, %c0_4], %2 {strides = array<i32>} : memref<128x16xf32, #tpu.memory_space<vmem>>, vector<128x3xf32>,
    return
  }
  func.func @transform_0(%arg0: i32) -> (i32, i32) {
    %c0_i32 = arith.constant 0 : i32
    %c0_i32_0 = arith.constant 0 : i32
    return %arg0, %c0_i32 : i32, i32
  }
  func.func @transform_1(%arg0: i32) -> (i32, i32) {
    %c0_i32 = arith.constant 0 : i32
    %c0_i32_0 = arith.constant 0 : i32
    return %arg0, %c0_i32 : i32, i32
  }
}

</mosaic_0001>

<bundles_post_ra>
// kernel: tpu_custom_call.1
= control target key start
LH: loop header
LB: loop body
LE: loop exit
PB: predicated region body
PF: predicated region fallthrough
CT: control target
= control target key end

     0   :  { %s208_s10 = smov 3   ;;  %s209_s11 = smov 115   ;;  %vm88_vm0 = vcmask 130072   ;;  %vm185_vm1 = vcmask 23552   ;;  %s396_s0 = inlined_call_operand.vmem [shape: f32[128,16], index: 0, kind: input, shape index: {}]   ;;  %s397_s1 = inlined_call_operand.vmem [shape: f32[128,16], index: 1, kind: output, shape index: {}]  }
   0x1   :  { %v10_v0 = vld [vmem:[%s396_s0 + $0x10] sm:$0xff]  ;;  %v8_v1 = vld [vmem:[%s396_s0] sm:$0xff]  ;;  %v11_v2 = vld [vmem:[%s396_s0 + $0x18] sm:$0xff] }
   0x2   :  { %44 = vrot.lane.b32.xlu1 %v10_v0, %s208_s10  ;;  %40 = vrot.lane.b32.xlu0 %v8_v1, %s208_s10  ;;  %v9_v3 = vld [vmem:[%s396_s0 + $0x8] sm:$0xff]  ;;  %v12_v5 = vld [vmem:[%s396_s0 + $0x20] sm:$0xff] }
   0x3   :  { %v13_v4 = vld [vmem:[%s396_s0 + $0x28] sm:$0xff]  ;;  %v15_v6 = vld [vmem:[%s396_s0 + $0x38] sm:$0xff]  ;;  %v14_v7 = vld [vmem:[%s396_s0 + $0x30] sm:$0xff] }
   0x4   :  { %v17_v8 = vld [vmem:[%s396_s0 + $0x48] sm:$0xff]  ;;  %v16_v9 = vld [vmem:[%s396_s0 + $0x40] sm:$0xff]  ;;  %v19_v10 = vld [vmem:[%s396_s0 + $0x58] sm:$0xff] }
   0x5   :  { %v18_v11 = vld [vmem:[%s396_s0 + $0x50] sm:$0xff]  ;;  %v21_v12 = vld [vmem:[%s396_s0 + $0x68] sm:$0xff]  ;;  %v20_v13 = vld [vmem:[%s396_s0 + $0x60] sm:$0xff] }
   0x6   :  { %46 = vrot.lane.b32.xlu1 %v11_v2, %s208_s10  ;;  %42 = vrot.lane.b32.xlu0 %v9_v3, %s208_s10  ;;  %v23_v14 = vld [vmem:[%s396_s0 + $0x78] sm:$0xff]  ;;  %v22_v15 = vld [vmem:[%s396_s0 + $0x70] sm:$0xff] }
   0xa   :  { %50 = vrot.lane.b32.xlu1 %v13_v4, %s208_s10  ;;  %48 = vrot.lane.b32.xlu0 %v12_v5, %s208_s10 }
   0xe   :  { %54 = vrot.lane.b32.xlu1 %v15_v6, %s208_s10  ;;  %52 = vrot.lane.b32.xlu0 %v14_v7, %s208_s10 }
  0x12   :  { %58 = vrot.lane.b32.xlu1 %v17_v8, %s208_s10  ;;  %56 = vrot.lane.b32.xlu0 %v16_v9, %s208_s10 }
  0x16   :  { %62 = vrot.lane.b32.xlu1 %v19_v10, %s208_s10  ;;  %60 = vrot.lane.b32.xlu0 %v18_v11, %s208_s10 }
  0x1a   :  { %66 = vrot.lane.b32.xlu1 %v21_v12, %s208_s10  ;;  %64 = vrot.lane.b32.xlu0 %v20_v13, %s208_s10 }
  0x1e   :  { %70 = vrot.lane.b32.xlu1 %v23_v14, %s208_s10  ;;  %68 = vrot.lane.b32.xlu0 %v22_v15, %s208_s10 }
  0x22   :  { %139 = vrot.lane.b32.xlu1 %v9_v3, %s209_s11  ;;  %137 = vrot.lane.b32.xlu0 %v8_v1, %s209_s11 }
  0x26   :  { %143 = vrot.lane.b32.xlu1 %v11_v2, %s209_s11  ;;  %141 = vrot.lane.b32.xlu0 %v10_v0, %s209_s11 }
  0x2a   :  { %147 = vrot.lane.b32.xlu1 %v13_v4, %s209_s11  ;;  %145 = vrot.lane.b32.xlu0 %v12_v5, %s209_s11 }
  0x2e   :  { %151 = vrot.lane.b32.xlu1 %v15_v6, %s209_s11  ;;  %149 = vrot.lane.b32.xlu0 %v14_v7, %s209_s11 }
  0x32   :  { %155 = vrot.lane.b32.xlu1 %v17_v8, %s209_s11  ;;  %153 = vrot.lane.b32.xlu0 %v16_v9, %s209_s11 }
  0x36   :  { %159 = vrot.lane.b32.xlu1 %v19_v10, %s209_s11  ;;  %157 = vrot.lane.b32.xlu0 %v18_v11, %s209_s11 }
  0x3a   :  { %163 = vrot.lane.b32.xlu1 %v21_v12, %s209_s11  ;;  %161 = vrot.lane.b32.xlu0 %v20_v13, %s209_s11 }
  0x3e   :  { %167 = vrot.lane.b32.xlu1 %v23_v14, %s209_s11  ;;  %165 = vrot.lane.b32.xlu0 %v22_v15, %s209_s11 }
  0x74   :  { %v45_v16 = vpop.permute.xlu1 %44  ;;  %v41_v17 = vpop.permute.xlu0 %40 }
  0x75   :  { %91 = vst.msk [vmem:[%s397_s1 + $0x10] sm:$0xff] %vm88_vm0, %v45_v16  ;;  %89 = vst.msk [vmem:[%s397_s1] sm:$0xff] %vm88_vm0, %v41_v17 }
  0x78   :  { %v47_v18 = vpop.permute.xlu1 %46  ;;  %v43_v19 = vpop.permute.xlu0 %42 }
  0x79   :  { %92 = vst.msk [vmem:[%s397_s1 + $0x18] sm:$0xff] %vm88_vm0, %v47_v18  ;;  %90 = vst.msk [vmem:[%s397_s1 + $0x8] sm:$0xff] %vm88_vm0, %v43_v19 }
  0x7c   :  { %v51_v20 = vpop.permute.xlu1 %50  ;;  %v49_v21 = vpop.permute.xlu0 %48 }
  0x7d   :  { %94 = vst.msk [vmem:[%s397_s1 + $0x28] sm:$0xff] %vm88_vm0, %v51_v20  ;;  %93 = vst.msk [vmem:[%s397_s1 + $0x20] sm:$0xff] %vm88_vm0, %v49_v21 }
  0x80   :  { %v55_v22 = vpop.permute.xlu1 %54  ;;  %v53_v23 = vpop.permute.xlu0 %52 }
  0x81   :  { %96 = vst.msk [vmem:[%s397_s1 + $0x38] sm:$0xff] %vm88_vm0, %v55_v22  ;;  %95 = vst.msk [vmem:[%s397_s1 + $0x30] sm:$0xff] %vm88_vm0, %v53_v23 }
  0x84   :  { %v59_v24 = vpop.permute.xlu1 %58  ;;  %v57_v25 = vpop.permute.xlu0 %56 }
  0x85   :  { %98 = vst.msk [vmem:[%s397_s1 + $0x48] sm:$0xff] %vm88_vm0, %v59_v24  ;;  %97 = vst.msk [vmem:[%s397_s1 + $0x40] sm:$0xff] %vm88_vm0, %v57_v25 }
  0x88   :  { %v63_v26 = vpop.permute.xlu1 %62  ;;  %v61_v27 = vpop.permute.xlu0 %60 }
  0x89   :  { %100 = vst.msk [vmem:[%s397_s1 + $0x58] sm:$0xff] %vm88_vm0, %v63_v26  ;;  %99 = vst.msk [vmem:[%s397_s1 + $0x50] sm:$0xff] %vm88_vm0, %v61_v27 }
  0x8c   :  { %v67_v28 = vpop.permute.xlu1 %66  ;;  %v65_v29 = vpop.permute.xlu0 %64 }
  0x8d   :  { %102 = vst.msk [vmem:[%s397_s1 + $0x68] sm:$0xff] %vm88_vm0, %v67_v28  ;;  %101 = vst.msk [vmem:[%s397_s1 + $0x60] sm:$0xff] %vm88_vm0, %v65_v29 }
  0x90   :  { %v71_v30 = vpop.permute.xlu1 %70  ;;  %v69_v31 = vpop.permute.xlu0 %68 }
  0x91   :  { %104 = vst.msk [vmem:[%s397_s1 + $0x78] sm:$0xff] %vm88_vm0, %v71_v30  ;;  %103 = vst.msk [vmem:[%s397_s1 + $0x70] sm:$0xff] %vm88_vm0, %v69_v31 }
  0x94   :  { %v140_v32 = vpop.permute.xlu1 %139  ;;  %v138_v33 = vpop.permute.xlu0 %137 }
  0x95   :  { %187 = vst.msk [vmem:[%s397_s1 + $0x8] sm:$0xff] %vm185_vm1, %v140_v32  ;;  %186 = vst.msk [vmem:[%s397_s1] sm:$0xff] %vm185_vm1, %v138_v33 }
  0x98   :  { %v144_v34 = vpop.permute.xlu1 %143  ;;  %v142_v35 = vpop.permute.xlu0 %141 }
  0x99   :  { %189 = vst.msk [vmem:[%s397_s1 + $0x18] sm:$0xff] %vm185_vm1, %v144_v34  ;;  %188 = vst.msk [vmem:[%s397_s1 + $0x10] sm:$0xff] %vm185_vm1, %v142_v35 }
  0x9c   :  { %v148_v36 = vpop.permute.xlu1 %147  ;;  %v146_v37 = vpop.permute.xlu0 %145 }
  0x9d   :  { %191 = vst.msk [vmem:[%s397_s1 + $0x28] sm:$0xff] %vm185_vm1, %v148_v36  ;;  %190 = vst.msk [vmem:[%s397_s1 + $0x20] sm:$0xff] %vm185_vm1, %v146_v37 }
  0xa0   :  { %v152_v38 = vpop.permute.xlu1 %151  ;;  %v150_v39 = vpop.permute.xlu0 %149 }
  0xa1   :  { %193 = vst.msk [vmem:[%s397_s1 + $0x38] sm:$0xff] %vm185_vm1, %v152_v38  ;;  %192 = vst.msk [vmem:[%s397_s1 + $0x30] sm:$0xff] %vm185_vm1, %v150_v39 }
  0xa4   :  { %v156_v40 = vpop.permute.xlu1 %155  ;;  %v154_v41 = vpop.permute.xlu0 %153 }
  0xa5   :  { %195 = vst.msk [vmem:[%s397_s1 + $0x48] sm:$0xff] %vm185_vm1, %v156_v40  ;;  %194 = vst.msk [vmem:[%s397_s1 + $0x40] sm:$0xff] %vm185_vm1, %v154_v41 }
  0xa8   :  { %v160_v42 = vpop.permute.xlu1 %159  ;;  %v158_v43 = vpop.permute.xlu0 %157 }
  0xa9   :  { %197 = vst.msk [vmem:[%s397_s1 + $0x58] sm:$0xff] %vm185_vm1, %v160_v42  ;;  %196 = vst.msk [vmem:[%s397_s1 + $0x50] sm:$0xff] %vm185_vm1, %v158_v43 }
  0xac   :  { %v164_v44 = vpop.permute.xlu1 %163  ;;  %v162_v45 = vpop.permute.xlu0 %161 }
  0xad   :  { %199 = vst.msk [vmem:[%s397_s1 + $0x68] sm:$0xff] %vm185_vm1, %v164_v44  ;;  %198 = vst.msk [vmem:[%s397_s1 + $0x60] sm:$0xff] %vm185_vm1, %v162_v45 }
  0xb0   :  { %v168_v46 = vpop.permute.xlu1 %167  ;;  %v166_v47 = vpop.permute.xlu0 %165 }
  0xb1   :  { %201 = vst.msk [vmem:[%s397_s1 + $0x78] sm:$0xff] %vm185_vm1, %v168_v46  ;;  %200 = vst.msk [vmem:[%s397_s1 + $0x70] sm:$0xff] %vm185_vm1, %v166_v47 }

</bundles_post_ra>
